<compile_context>
chip_gen: v5e
topology: v5e:2x2
jax: 0.10.0
libtpu: 0.0.40
codegen_flags: <defaults>
</compile_context>

<pallas_src>
import functools

import jax
import jax.numpy as jnp
from jax.experimental import pallas as pl
from jax.experimental.pallas import tpu as pltpu


def _min_filter_block_kernel(x_ref, o_ref, *, p):
    """Block of depth slices: separable min filter with edge-clamped halo.

    x_ref, o_ref: (TD, H, W) blocks in VMEM.
    """
    td, H, W = x_ref.shape

    # Index vectors for the boundary masks (hoisted out of the depth loop).
    lane = jax.lax.broadcasted_iota(jnp.int32, (1, W), 1)   # along W (lanes)
    sub = jax.lax.broadcasted_iota(jnp.int32, (H, 1), 0)    # along H (sublanes)

    @pl.loop(0, td)
    def _(t):
        x = x_ref[t]                                         # (H, W)

        # --- Row pass: min over lane offsets [-p, p] with edge clamping. ---
        # Out-of-range contributions are replaced by the center value x[h, w],
        # which is always inside the clamped window, so the min is unchanged.
        # pltpu.roll only accepts non-negative shifts, so a "shift by -d" is
        # expressed as the circular "shift by W - d" and the wrapped lanes are
        # masked off.
        acc = x
        for d in range(1, p + 1):
            r = pltpu.roll(x, shift=W - d, axis=1)           # r[w] = x[(w+d)%W]
            acc = jnp.minimum(acc, jnp.where(lane < W - d, r, x))
            l = pltpu.roll(x, shift=d, axis=1)               # l[w] = x[(w-d)%W]
            acc = jnp.minimum(acc, jnp.where(lane >= d, l, x))
        row_min = acc

        # --- Column pass: min over sublane offsets [-p, p], edge clamped. ---
        acc = row_min
        for d in range(1, p + 1):
            dn = pltpu.roll(row_min, shift=H - d, axis=0)    # dn[h] = rm[(h+d)%H]
            acc = jnp.minimum(acc, jnp.where(sub < H - d, dn, row_min))
            up = pltpu.roll(row_min, shift=d, axis=0)        # up[h] = rm[(h-d)%H]
            acc = jnp.minimum(acc, jnp.where(sub >= d, up, row_min))

        o_ref[t] = acc


def minimum_filter_3d(volume, kernel_size=3, block_depth=None):
    """Pallas equivalent of MinimumFilter3D.forward for a [D, H, W] input."""
    if kernel_size % 2 == 0:
        raise ValueError("Kernel size must be odd")
    D, H, W = volume.shape
    p = kernel_size // 2
    if p == 0:
        return volume  # kernel_size == 1: identity
    if p >= H or p >= W:
        raise ValueError("reflect padding requires kernel_size // 2 < H and < W")

    itemsize = jnp.dtype(volume.dtype).itemsize
    if block_depth is None:
        # ~2 MiB input blocks (double-buffered in+out fits comfortably in the
        # scoped VMEM limit on v5e/v6e/v7x), capped to keep the in-kernel depth
        # loop modest, and at least 2 grid steps when D allows so the grid can
        # be sharded across TensorCores.
        target_bytes = 2 * 1024 * 1024
        td = max(1, min(D, target_bytes // max(1, H * W * itemsize), 128))
        if td >= D and D > 1:
            td = pl.cdiv(D, 2)
    else:
        td = max(1, min(block_depth, D))
    grid = (pl.cdiv(D, td),)

    kernel = functools.partial(_min_filter_block_kernel, p=p)

    # Purely bandwidth-bound min/select work: ~8p VPU ops per element,
    # one read + one write of the volume.
    cost = pl.CostEstimate(
        flops=8 * p * D * H * W,
        transcendentals=0,
        bytes_accessed=2 * D * H * W * itemsize,
    )

    return pl.pallas_call(
        kernel,
        out_shape=jax.ShapeDtypeStruct((D, H, W), volume.dtype),
        grid=grid,
        in_specs=[pl.BlockSpec((td, H, W), lambda i: (i, 0, 0))],
        out_specs=pl.BlockSpec((td, H, W), lambda i: (i, 0, 0)),
        compiler_params=pltpu.CompilerParams(
            dimension_semantics=("parallel",),
            vmem_limit_bytes=32 * 1024 * 1024,
        ),
        cost_estimate=cost,
    )(volume)


def _reference_min_filter_3d(volume, kernel_size=3):
    """Pure-JAX reference mirroring the PyTorch reflect-pad + unfold + min."""
    D, H, W = volume.shape
    p = kernel_size // 2
    padded = jnp.pad(volume, ((0, 0), (p, p), (p, p)), mode="reflect")
    out = padded[:, p:p + H, p:p + W]  # start from center slice (no inf init)
    for ki in range(kernel_size):
        for kj in range(kernel_size):
            out = jnp.minimum(out, padded[:, ki:ki + H, kj:kj + W])
    return out


if __name__ == "__main__":
    # MinimumFilter3D has no learnable parameters; only kernel_size config.
    kernel_size = 3
    D, H, W = 8, 16, 128  # small 3-D volume; W=128 keeps the lane dim dense

    key = jax.random.PRNGKey(0)
    x = jax.random.normal(key, (D, H, W), dtype=jnp.float32)

    out = minimum_filter_3d(x, kernel_size=kernel_size)
    out = jax.block_until_ready(out)

    ref = _reference_min_filter_3d(x, kernel_size=kernel_size)
    assert out.shape == x.shape and out.dtype == x.dtype
    assert jnp.allclose(out, ref), "Pallas output mismatch vs reference"

    print("KERNEL_OK")
</pallas_src>

<mosaic_0001>
module attributes {stable_mosaic.version = 11 : i64} {
  func.func @_min_filter_block_kernel(%arg0: i32, %arg1: memref<4x16x128xf32, #tpu.memory_space<vmem>>, %arg2: memref<4x16x128xf32, #tpu.memory_space<vmem>>) attributes {dimension_semantics = [#tpu.dimension_semantics<parallel>], iteration_bounds = array<i64: 2>, scalar_prefetch = 0 : i64, scratch_operands = 0 : i64, tpu.core_type = #tpu.core_type<tc>, window_params = [{transform_indices = @transform_0, window_bounds = array<i64: 4, 16, 128>}, {transform_indices = @transform_1, window_bounds = array<i64: 4, 16, 128>}]} {
    %0 = tpu.iota {dimensions = array<i32: 1>} : vector<1x128xi32>
    %1 = tpu.iota {dimensions = array<i32: 0>} : vector<16x1xi32>
    %c0_i32 = arith.constant 0 : i32
    %c4_i32 = arith.constant 4 : i32
    %2 = arith.addi %c0_i32, %c4_i32 : i32
    %c1_i32 = arith.constant 1 : i32
    scf.for %arg3 = %c0_i32 to %2 step %c1_i32  : i32 {
      %c1_i32_1 = arith.constant 1 : i32
      %3 = arith.muli %arg3, %c1_i32_1 : i32
      %c0_i32_2 = arith.constant 0 : i32
      %4 = arith.addi %c0_i32_2, %3 : i32
      %5 = arith.index_cast %4 : i32 to index
      %c0 = arith.constant 0 : index
      %c0_3 = arith.constant 0 : index
      %6 = vector.load %arg1[%5, %c0, %c0_3] : memref<4x16x128xf32, #tpu.memory_space<vmem>>, vector<1x16x128xf32>
      %7 = vector.shape_cast %6 : vector<1x16x128xf32> to vector<16x128xf32>
      %c127_i32 = arith.constant 127 : i32
      %8 = tpu.dynamic_rotate %7 by %c127_i32 dim 1 : vector<16x128xf32>, i32 -> vector<16x128xf32>
      %c127_i32_4 = arith.constant 127 : i32
      %9 = vector.broadcast %c127_i32_4 : i32 to vector<1x128xi32>
      %10 = arith.cmpi slt, %0, %9 : vector<1x128xi32>
      %11 = vector.shape_cast %10 : vector<1x128xi1> to vector<1x128xi1>
      %12 = vector.broadcast %11 : vector<1x128xi1> to vector<16x128xi1>
      %13 = arith.select %12, %8, %7 : vector<16x128xi1>, vector<16x128xf32>
      %14 = arith.minimumf %7, %13 : vector<16x128xf32>
      %c1_i32_5 = arith.constant 1 : i32
      %15 = tpu.dynamic_rotate %7 by %c1_i32_5 dim 1 : vector<16x128xf32>, i32 -> vector<16x128xf32>
      %c1_i32_6 = arith.constant 1 : i32
      %16 = vector.broadcast %c1_i32_6 : i32 to vector<1x128xi32>
      %17 = arith.cmpi sge, %0, %16 : vector<1x128xi32>
      %18 = vector.shape_cast %17 : vector<1x128xi1> to vector<1x128xi1>
      %19 = vector.broadcast %18 : vector<1x128xi1> to vector<16x128xi1>
      %20 = arith.select %19, %15, %7 : vector<16x128xi1>, vector<16x128xf32>
      %21 = arith.minimumf %14, %20 : vector<16x128xf32>
      %c15_i32 = arith.constant 15 : i32
      %22 = tpu.dynamic_rotate %21 by %c15_i32 dim 0 : vector<16x128xf32>, i32 -> vector<16x128xf32>
      %c15_i32_7 = arith.constant 15 : i32
      %23 = vector.broadcast %c15_i32_7 : i32 to vector<16x1xi32>
      %24 = arith.cmpi slt, %1, %23 : vector<16x1xi32>
      %25 = vector.shape_cast %24 : vector<16x1xi1> to vector<16x1xi1>
      %26 = vector.broadcast %25 : vector<16x1xi1> to vector<16x128xi1>
      %27 = arith.select %26, %22, %21 : vector<16x128xi1>, vector<16x128xf32>
      %28 = arith.minimumf %21, %27 : vector<16x128xf32>
      %c1_i32_8 = arith.constant 1 : i32
      %29 = tpu.dynamic_rotate %21 by %c1_i32_8 dim 0 : vector<16x128xf32>, i32 -> vector<16x128xf32>
      %c1_i32_9 = arith.constant 1 : i32
      %30 = vector.broadcast %c1_i32_9 : i32 to vector<16x1xi32>
      %31 = arith.cmpi sge, %1, %30 : vector<16x1xi32>
      %32 = vector.shape_cast %31 : vector<16x1xi1> to vector<16x1xi1>
      %33 = vector.broadcast %32 : vector<16x1xi1> to vector<16x128xi1>
      %34 = arith.select %33, %29, %21 : vector<16x128xi1>, vector<16x128xf32>
      %35 = arith.minimumf %28, %34 : vector<16x128xf32>
      %36 = arith.index_cast %4 : i32 to index
      %c0_10 = arith.constant 0 : index
      %c0_11 = arith.constant 0 : index
      %37 = vector.load %arg2[%36, %c0_10, %c0_11] : memref<4x16x128xf32, #tpu.memory_space<vmem>>, vector<1x16x128xf32>
      %38 = vector.shape_cast %37 : vector<1x16x128xf32> to vector<16x128xf32>
      %39 = vector.shape_cast %35 : vector<16x128xf32> to vector<1x16x128xf32>
      tpu.vector_store %arg2[%36, %c0_10, %c0_11], %39 {strides = array<i32>} : memref<4x16x128xf32, #tpu.memory_space<vmem>>, vector<1x16x128xf32>,
    }
    %c4_i32_0 = arith.constant 4 : i32
    return
  }
  func.func @transform_0(%arg0: i32) -> (i32, i32, i32) {
    %c0_i32 = arith.constant 0 : i32
    %c0_i32_0 = arith.constant 0 : i32
    %c0_i32_1 = arith.constant 0 : i32
    return %arg0, %c0_i32, %c0_i32_0 : i32, i32, i32
  }
  func.func @transform_1(%arg0: i32) -> (i32, i32, i32) {
    %c0_i32 = arith.constant 0 : i32
    %c0_i32_0 = arith.constant 0 : i32
    %c0_i32_1 = arith.constant 0 : i32
    return %arg0, %c0_i32, %c0_i32_0 : i32, i32, i32
  }
}

</mosaic_0001>

<bundles_post_ra>
// kernel: tpu_custom_call.1
= control target key start
LH: loop header
LB: loop body
LE: loop exit
PB: predicated region body
PF: predicated region fallthrough
CT: control target
= control target key end

     0   :  { %6 = vsyncpa [#allocation3], 0  ;;  %s659_s0 = inlined_call_operand.hbm [shape: f32[8,16,128], index: 0, kind: input, shape index: {}]   ;;  %s660_s1 = inlined_call_operand.hbm [shape: f32[8,16,128], index: 1, kind: output, shape index: {}]  }
   0x1   :  { %8 = vsyncpa [#allocation3 + $0x1], 0 }
   0x2   :  { %9 = vsyncpa [#allocation4], 0 }
   0x3   :  { %11 = vsyncpa [#allocation4 + $0x1], 0  ;;  %s512_s6 = smov 0   ;;  %s514_s7 = smov 0  }
   0x4   :  { %s516_s8 = smov 0   ;;  %s518_s9 = smov 0  }
   0x5 LB: > { %s533_s10 = sadd.s32 4294967295, %s490_s9   ;;  %s309_s11 = sadd.s32 4294967294, %s490_s9   ;;  %s490_s9 = sphi %s518_s9, %s670_s9   ;;  %s486_s8 = sphi %s516_s8, %s669_s8   ;;  %s482_s7 = sphi %s514_s7, %s668_s7   ;;  %s478_s6 = sphi %s512_s6, %s667_s6  }
   0x6   : > { %s537_s12 = sadd.s32 1, %s490_s9   ;;  %s24_s13 = sadd.s32 1, %s486_s8 }
   0x7   : > { %s21_s14 = ssub.s32 %s490_s9, %s537_s12  ;;  %p31_p0 = scmp.ne.s32.totalorder %s486_s8, %s482_s7 }
   0x8   : > { %p22_p1 = scmp.eq.s32.totalorder %s21_s14, 0  ;;  %p32_p2 = scmp.eq.s32.totalorder %s490_s9, 0 }
   0x9   : > { %p37_p3 = scmp.ne.s32.totalorder %s482_s7, %s478_s6  ;;  %p38_p4 = scmp.eq.s32.totalorder %s533_s10, 0 }
   0xa   : > { %s549_s15 = scalar_select %p22_p1, %s486_s8, %s24_s13  }
   0xb   : > { %p551_p5 = por %p32_p2, %p31_p0  ;;  %p555_p6 = por %p38_p4, %p37_p3 }
   0xc   : > { %p61_p7 = scmp.eq.s32.totalorder %s533_s10, 1  ;;  %p67_p8 = scmp.eq.s32.totalorder %s309_s11, 1 }
   0xd   : > { %p342_p10 = scmp.lt.s32.totalorder %s490_s9, 2  ;;  %s87_s20 = sand.u32 1, %s486_s8  }
   0xe   : > { %p562_p11 = por %p61_p7, %p31_p0  ;;  %p566_p12 = por %p67_p8, %p37_p3 }
   0xf   : > { %s327_s21 = sshll.u32 %s490_s9, 6  ;;  %s312_s22 = sshll.u32 %s87_s20, 6 }
  0x10   : > { %s97_s25 = scalar_lea.hbm %s659_s0, %s327_s21  ;;  %s91_s27 = scalar_lea.vmem [#allocation2], %s312_s22 }
  0x11   : > { %s98_s26 = sshll.u32 %s97_s25, 4  ;;  %s100_s28 = sshll.u32 %s91_s27, 4  ;;  %s99_s26 = int_to_ptr.hbm [resolvable:$true] %s98_s26  ;;  %s101_s28 = int_to_ptr.vmem [resolvable:$true] %s100_s28 }
  0x12   : > { %p577_p13 = pnand %p342_p10, %p551_p5  ;;  %p316_p0 = scmp.ge.s32.totalorder %s490_s9, 1 }
  0x13   : > { %p108_p1 = scmp.lt.s32.totalorder %s490_s9, 3  ;;  %s88_s30 = scalar_lea.sflag [#allocation3], %s87_s20 }
  0x14   : > { %s390_s2 = sshra.s32 %s99_s26, 4  ;;  %p394_p3 = pneg %p577_p13  ;;  %s391_s2 = int_to_ptr.hbm [resolvable:$true] %s390_s2 }
  0x15   : > { %s392_s3 = scalar_lea.hbm %s391_s2, 64  ;;  %s397_s11 = scalar_lea.hbm %s659_s0, 128 }
  0x16   : > { %p393_p2 = scmp.ne.s32.totalorder %s391_s2, %s392_s3  ;;  %p398_p5 = scmp.lt.s32.totalorder %s391_s2, %s659_s0 }
  0x17   : > { %p399_p8 = scmp.lt.s32.totalorder %s397_s11, %s392_s3 }
  0x18   : > { %p395_p4 = pnand %p394_p3, %p393_p2 }
  0x19   : > { %p400_p10 = por %p399_p8, %p398_p5 }
  0x1a   : > { %p396_p7 = pneg %p395_p4 }
  0x1c   : > { %p401_p9 = pnand %p400_p10, %p396_p7 }
  0x1e   : > { %404 = shalt.err (!%p401_p9)
}
  0x1f   : > { %s496_s16 = smov 128   ;;  %s497_s20 = smov 8  }
  0x20   : > { %337 = dma.hbm_to_vmem [thread:$0]  (!%p577_p13), %s99_s26, 1024, %s101_s28, %s88_s30, %s496_s16, %s496_s16, %s497_s20  }
  0x21   : > { %p109_p2 = pnand %p316_p0, %p108_p1 }
  0x22   : > { %s598_s21 = sand.u32 (!%p109_p2), 1, %s482_s7  }
  0x23   : > { %112 = sbr.rel (%p109_p2) target bundleno = 189 (0xbd), region = 24  ;;  %s317_s22 = sshll.u32 (!%p109_p2), %s598_s21, 6 }
  0x24   : > { %s115_s23 = scalar_lea.sflag (!%p109_p2), [#allocation3], %s598_s21  ;;  %s602_s24 = scalar_lea.vmem (!%p109_p2), [#allocation2], %s317_s22 }
  0x28   : > { %469 = dma.done.wait (%p555_p6), %s115_s23, 1024  }
  0x29   : > { %471 = vsyncadd (%p555_p6), %s115_s23, 4294966272  ;;  %v140_v0 = vlaneseq  ;;  %s608_s25 = scalar_lea.vmem [#allocation5], %s317_s22  ;;  %s610_s26 = smov 0  }
  0x2b   : > { %v141_v1 = vand.u32 127, %v140_v0  ;;  %v143_v2 = vshrl.u32 %v140_v0, 7 }
  0x2d   : > { %v144_v3 = vadd.s32 8, %v143_v2 }
  0x2e LB: >> { %s319_s27 = sshll.u32 %s494_s26, 4  ;;  %s498_s28 = smov 127   ;;  %vm159_vm0 = vcmp.lt.s32.totalorder %v141_v1, 127  ;;  %vm170_vm1 = vcmp.ge.s32.totalorder %v141_v1, 1  ;;  %vm179_vm2 = vcmp.lt.s32.totalorder %v143_v2, 7  ;;  %vm194_vm4 = vcmp.lt.s32.totalorder %v143_v2, 1  ;;  %s494_s26 = sphi %s610_s26, %s150_s26  }
  0x2f   : >> { %s152_s17 = scalar_lea.vmem %s602_s24, %s319_s27 [#allocation2]  ;;  %s499_s29 = smov 1   ;;  %vm183_vm3 = vcmp.lt.s32.totalorder %v144_v3, 15  ;;  %vm197_vm5 = vcmp.ge.s32.totalorder %v143_v2, 1 }
  0x30   : >> { %v153_v4 = vld [vmem:[%s152_s17] sm:$0xff]  ;;  %v154_v5 = vld [vmem:[%s152_s17 + $0x8] sm:$0xff]  ;;  %s207_s30 = scalar_lea.vmem %s608_s25, %s319_s27 [#allocation5]  ;;  %s150_s26 = sadd.s32 1, %s494_s26  }
  0x31   : >> { %155 = vrot.lane.b32.xlu0 %v153_v4, %s498_s28  ;;  %166 = vrot.lane.b32.xlu1 %v153_v4, %s499_s29  ;;  %p147_p6 = scmp.ge.s32.totalorder %s150_s26, 4  }
  0x32   : > { %s329_s2 = sshll.u32 (%p147_p6), %s533_s10, 6  ;;  %s224_s11 = sshll.u32 (%p147_p6), %s608_s25, 4  ;;  %s225_s11 = int_to_ptr.vmem [resolvable:$true] %s224_s11 }
  0x33   : > { %s223_s5 = scalar_lea.hbm (%p147_p6), %s660_s1, %s329_s2  ;;  %s211_s14 = scalar_lea.sflag (%p147_p6), [#allocation4], %s598_s21 }
  0x34   : > { %s226_s13 = sshll.u32 (%p147_p6), %s223_s5, 4  ;;  %s440_s10 = scalar_lea.hbm (%p147_p6), %s660_s1, 128  ;;  %s227_s13 = int_to_ptr.hbm [resolvable:$true] %s226_s13 }
  0x35   : > { %s434_s16 = sshra.s32 (%p147_p6), %s227_s13, 4  ;;  %s435_s16 = int_to_ptr.hbm [resolvable:$true] %s434_s16 }
  0x36   : > { %s436_s20 = scalar_lea.hbm (%p147_p6), %s435_s16, 64  ;;  %p441_p1 = scmp.lt.s32.totalorder (%p147_p6), %s435_s16, %s660_s1 }
  0x37   : > { %p437_p9 = scmp.ne.s32.totalorder (%p147_p6), %s435_s16, %s436_s20  ;;  %p442_p3 = scmp.lt.s32.totalorder (%p147_p6), %s440_s10, %s436_s20 }
  0x39   : >> { %157 = vrot.lane.b32.xlu0 %v154_v5, %s498_s28  ;;  %168 = vrot.lane.b32.xlu1 %v154_v5, %s499_s29  ;;  %p438_p13 = pnand (%p147_p6), %p437_p9, %p562_p11  ;;  %p443_p4 = por (%p147_p6), %p442_p3, %p441_p1 }
  0x3b   : > { %p439_p0 = pneg (%p147_p6), %p438_p13 }
  0x3d   : > { %p444_p7 = pnand (%p147_p6), %p443_p4, %p439_p0 }
  0xa3   : >> { %v156_v6 = vpop.permute.xlu0 %155  ;;  %v167_v7 = vpop.permute.xlu1 %166 }
  0xa4   : >> { %v162_v8 = vsel %vm159_vm0, %v156_v6, %v153_v4  ;;  %v173_v10 = vsel %vm170_vm1, %v167_v7, %v153_v4 }
  0xa5   : >> { %v164_v9 = vmin.f32 %v153_v4, %v162_v8 }
  0xa7   : >> { %v175_v15 = vmin.f32 %v164_v9, %v173_v10 }
  0xa9   : >> { %v177_v18 = vrot.slane %v175_v15, 1  ;;  %v192_v19 = vrot.slane %v175_v15, 7 }
  0xab   : >> { %v158_v11 = vpop.permute.xlu0 %157  ;;  %v169_v12 = vpop.permute.xlu1 %168 }
  0xac   : >> { %v163_v13 = vsel %vm159_vm0, %v158_v11, %v154_v5  ;;  %v174_v14 = vsel %vm170_vm1, %v169_v12, %v154_v5 }
  0xad   : >> { %v165_v16 = vmin.f32 %v154_v5, %v163_v13 }
  0xaf   : >> { %v176_v17 = vmin.f32 %v165_v16, %v174_v14 }
  0xb1   : >> { %v178_v20 = vrot.slane %v176_v17, 1  ;;  %v193_v21 = vrot.slane %v176_v17, 7 }
  0xb3   : >> { %v180_v22 = vsel %vm179_vm2, %v177_v18, %v178_v20  ;;  %v181_v23 = vsel %vm179_vm2, %v178_v20, %v177_v18  ;;  %v196_v24 = vsel %vm194_vm4, %v193_v21, %v192_v19  ;;  %v195_v29 = vsel %vm194_vm4, %v192_v19, %v193_v21 }
  0xb4   : >> { %v189_v25 = vsel %vm183_vm3, %v181_v23, %v176_v17  ;;  %v190_v26 = vmin.f32 %v175_v15, %v180_v22  ;;  %v203_v27 = vsel %vm197_vm5, %v196_v24, %v175_v15 }
  0xb5   : >> { %v191_v28 = vmin.f32 %v176_v17, %v189_v25  ;;  %149 = sbr.rel (!%p147_p6) target bundleno = 46 (0x2e), region = 78 }
  0xb6   : >> { %v205_v30 = vmin.f32 %v190_v26, %v203_v27 }
  0xb7   : >> { %v206_v31 = vmin.f32 %v191_v28, %v195_v29 }
  0xb8   : >> { %208 = vst [vmem:[%s207_s30] sm:$0xff] %v205_v30 }
  0xb9   : >> { %209 = vst [vmem:[%s207_s30 + $0x8] sm:$0xff] %v206_v31 }
  0xba   : > { %447 = shalt.err (!%p444_p7)
}
  0xbb   : > { %s500_s21 = smov 128   ;;  %s501_s25 = smov 8  }
  0xbc   : > { %332 = dma.vmem_to_hbm [thread:$0]  (%p562_p11), %s225_s11, 1024, %s227_s13, %s211_s14, %s500_s21, %s500_s21, %s501_s25  }
  0xbd PF: > { %s241_s27 = sand.u32 1, %s478_s6   ;;  %p666_p5 = scmp.ge.s32.totalorder %s490_s9, 2 }
  0xbe   : > { %s242_s17 = scalar_lea.sflag [#allocation4], %s241_s27 }
  0xbf   : > { %p339_p8 = pnand %p666_p5, %p566_p12 }
  0xc1   : > { %p340_p10 = pneg %p339_p8 }
  0xc3   : > { %473 = dma.done.wait (%p340_p10), %s242_s17, 1024  }
  0xc4   : > { %475 = vsyncadd (%p340_p10), %s242_s17, 4294966272  ;;  %p14_p2 = scmp.ge.s32.totalorder %s537_s12, 4   ;;  %s667_s6 = smov %s482_s7 }
  0xc5   : > { %s668_s7 = smov %s486_s8  ;;  %s669_s8 = smov %s549_s15 }
  0xc6   : > { %s670_s9 = smov %s537_s12  ;;  %16 = sbr.rel (!%p14_p2) target bundleno = 5 (0x5), region = 89 }
  0xcb   :  { %248 = vsyncpa [#allocation3], 1 }
  0xcc   :  { %250 = vsyncpa [#allocation3 + $0x1], 1 }
  0xcd   :  { %251 = vsyncpa [#allocation4], 1 }
  0xce   :  { %253 = vsyncpa [#allocation4 + $0x1], 1 }

</bundles_post_ra>
